<compile_context>
chip_gen: v7x
topology: tpu7x:2x2x1
jax: 0.10.0
libtpu: 0.0.40
codegen_flags: <defaults>
</compile_context>

<pallas_src>
import functools

import jax
import jax.numpy as jnp
from jax.experimental import pallas as pl
from jax.experimental.pallas import tpu as pltpu


def _round_up(x, m):
    return ((x + m - 1) // m) * m


# ---------------------------------------------------------------------------
# Tile selection
# ---------------------------------------------------------------------------
def _pick_batch_tile(B):
    """Batch rows per grid step.  The pooled/logits outputs are 2-D, so the
    block's second-to-last dim (the batch tile) must be a multiple of 8 or the
    full batch.  Prefer a multiple of 8 that still leaves >=2 parallel grid
    steps (v7x megacore); otherwise fall back to the full batch."""
    if B >= 16 and B % 8 == 0:
        for tb in (64, 32, 16, 8):
            if B % tb == 0 and B // tb >= 2:
                return tb
    return B


def _pick_spatial_tile(Sp, TB, K, *, budget_bytes=6 * 1024 * 1024):
    """Spatial rows per grid step: a multiple of 8 dividing Sp, sized so the
    double-buffered patch block stays within `budget_bytes` (fits v5e's 16 MiB
    default scoped VMEM and v7x's 64 MiB total with headroom)."""
    if Sp <= 8:
        return Sp
    cap = max(8, budget_bytes // max(2 * TB * K * 4, 1))
    cap = min(cap, max(Sp // 2, 8))      # keep >=2 reduction steps if possible
    t = max(8, (cap // 8) * 8)
    while t >= 8:
        if Sp % t == 0:
            return t
        t -= 8
    return Sp


# ---------------------------------------------------------------------------
# Fused kernels: patch-embed projection + spatial pooling + classifier.
# Grid = (batch tiles, spatial tiles); spatial axis is the reduction.
# ---------------------------------------------------------------------------
def _fused_masked_kernel(p_ref, w_ref, b_ref, m_ref, cw_ref, cb_ref,
                         logits_ref, pooled_ref, bg_ref,
                         tot_ref, fg_ref, msum_ref, *, spatial):
    s_idx = pl.program_id(1)

    @pl.when(s_idx == 0)
    def _init():
        tot_ref[...] = jnp.zeros_like(tot_ref)
        fg_ref[...] = jnp.zeros_like(fg_ref)
        msum_ref[...] = jnp.zeros_like(msum_ref)

    tb, ts, k = p_ref.shape
    d = w_ref.shape[1]
    # Patch-embed this (TB, tS) spatial tile on the MXU (bias deferred to the
    # finalize step so zero-padded spatial rows contribute nothing).
    feats = jnp.dot(p_ref[...].reshape(tb * ts, k), w_ref[...],
                    preferred_element_type=jnp.float32).reshape(tb, ts, d)
    m = m_ref[...]                                        # (TB, tS, 1)
    tot_ref[...] += jnp.sum(feats, axis=1)                # (TB, D)
    fg_ref[...] += jnp.sum(feats * m, axis=1)             # (TB, D)
    msum_ref[...] += jnp.sum(m, axis=1)                   # (TB, 1)

    @pl.when(s_idx == pl.num_programs(1) - 1)
    def _finalize():
        b = b_ref[...]                                    # (1, D)
        msum = msum_ref[...]                              # (TB, 1)
        total = tot_ref[...] + spatial * b                # sum_s (x_s W + b)
        fg = fg_ref[...] + msum * b                       # sum_s m_s (x_s W + b)
        pooled = fg * pl.reciprocal(msum + 1e-8, approx=True)
        bg = (total - fg) * pl.reciprocal((spatial - msum) + 1e-8, approx=True)
        pooled_ref[...] = pooled
        bg_ref[...] = bg
        logits_ref[...] = (
            jnp.dot(pooled, cw_ref[...], preferred_element_type=jnp.float32)
            + cb_ref[...])


def _fused_unmasked_kernel(p_ref, w_ref, b_ref, cw_ref, cb_ref,
                           logits_ref, pooled_ref, bg_ref,
                           tot_ref, *, spatial):
    s_idx = pl.program_id(1)

    @pl.when(s_idx == 0)
    def _init():
        tot_ref[...] = jnp.zeros_like(tot_ref)

    tb, ts, k = p_ref.shape
    d = w_ref.shape[1]
    feats = jnp.dot(p_ref[...].reshape(tb * ts, k), w_ref[...],
                    preferred_element_type=jnp.float32).reshape(tb, ts, d)
    tot_ref[...] += jnp.sum(feats, axis=1)

    @pl.when(s_idx == pl.num_programs(1) - 1)
    def _finalize():
        # adaptive_avg_pool2d((1,1)) == mean over spatial positions.
        pooled = tot_ref[...] * (1.0 / spatial) + b_ref[...]
        pooled_ref[...] = pooled
        bg_ref[...] = pooled
        logits_ref[...] = (
            jnp.dot(pooled, cw_ref[...], preferred_element_type=jnp.float32)
            + cb_ref[...])


def fused_pool_classify(p, w, b, m, cw, cb, *, spatial):
    """p: (B, Sp, K) f32, w: (K, D), b: (1, D), m: (B, Sp, 1) f32 or None,
    cw: (D, NCp), cb: (1, NCp).  Returns (logits_pad, pooled, bg)."""
    B, Sp, K = p.shape
    D = w.shape[1]
    NCp = cw.shape[1]

    TB = _pick_batch_tile(B)
    tS = _pick_spatial_tile(Sp, TB, K)
    grid = (B // TB, Sp // tS)

    p_spec = pl.BlockSpec((TB, tS, K), lambda i, s: (i, s, 0))
    w_spec = pl.BlockSpec((K, D), lambda i, s: (0, 0))
    b_spec = pl.BlockSpec((1, D), lambda i, s: (0, 0))
    cw_spec = pl.BlockSpec((D, NCp), lambda i, s: (0, 0))
    cb_spec = pl.BlockSpec((1, NCp), lambda i, s: (0, 0))

    out_shape = (
        jax.ShapeDtypeStruct((B, NCp), jnp.float32),   # lane-padded logits
        jax.ShapeDtypeStruct((B, D), jnp.float32),     # pooled
        jax.ShapeDtypeStruct((B, D), jnp.float32),     # background_pooled
    )
    out_specs = (
        pl.BlockSpec((TB, NCp), lambda i, s: (i, 0)),
        pl.BlockSpec((TB, D), lambda i, s: (i, 0)),
        pl.BlockSpec((TB, D), lambda i, s: (i, 0)),
    )
    cparams = pltpu.CompilerParams(
        dimension_semantics=("parallel", "arbitrary"),
        vmem_limit_bytes=32 * 1024 * 1024,
    )

    if m is not None:
        kernel = functools.partial(_fused_masked_kernel, spatial=float(spatial))
        return pl.pallas_call(
            kernel,
            out_shape=out_shape,
            grid=grid,
            in_specs=[p_spec, w_spec, b_spec,
                      pl.BlockSpec((TB, tS, 1), lambda i, s: (i, s, 0)),
                      cw_spec, cb_spec],
            out_specs=out_specs,
            scratch_shapes=[pltpu.VMEM((TB, D), jnp.float32),
                            pltpu.VMEM((TB, D), jnp.float32),
                            pltpu.VMEM((TB, 1), jnp.float32)],
            compiler_params=cparams,
        )(p, w, b, m, cw, cb)

    kernel = functools.partial(_fused_unmasked_kernel, spatial=float(spatial))
    return pl.pallas_call(
        kernel,
        out_shape=out_shape,
        grid=grid,
        in_specs=[p_spec, w_spec, b_spec, cw_spec, cb_spec],
        out_specs=out_specs,
        scratch_shapes=[pltpu.VMEM((TB, D), jnp.float32)],
        compiler_params=cparams,
    )(p, w, b, cw, cb)


# ---------------------------------------------------------------------------
# Glue: bilinear mask downsample matching F.interpolate(..., mode='bilinear',
# align_corners=False), as two tiny dense interpolation matmuls (plain XLA).
# ---------------------------------------------------------------------------
def _interp_matrix(out_size, in_size):
    scale = in_size / out_size
    src = (jnp.arange(out_size, dtype=jnp.float32) + 0.5) * scale - 0.5
    src = jnp.clip(src, 0.0, in_size - 1)
    i0 = jnp.minimum(jnp.floor(src).astype(jnp.int32), in_size - 1)
    i1 = jnp.minimum(i0 + 1, in_size - 1)
    frac = src - i0.astype(jnp.float32)
    m = ((1.0 - frac)[:, None] * jax.nn.one_hot(i0, in_size, dtype=jnp.float32)
         + frac[:, None] * jax.nn.one_hot(i1, in_size, dtype=jnp.float32))
    return m                                              # (out_size, in_size)


def bilinear_resize_nchw(x, out_h, out_w):
    Rm = _interp_matrix(out_h, x.shape[2])
    Cm = _interp_matrix(out_w, x.shape[3])
    y = jnp.einsum("oh,bchw->bcow", Rm, x)
    y = jnp.einsum("bcow,pw->bcop", y, Cm)
    return y                                              # (B, C, out_h, out_w)


# ---------------------------------------------------------------------------
# Full forward
# ---------------------------------------------------------------------------
def swin_mim_classifier_forward(params, x, mask=None, *, patch_size=4):
    B, C, H, W = x.shape
    Hp, Wp = H // patch_size, W // patch_size
    S = Hp * Wp
    K = C * patch_size * patch_size

    # encoder.forward_features stand-in: non-overlapping patch extraction
    # (layout plumbing in XLA) + linear projection (inside the fused kernel).
    # TODO(synk): a real Swin encoder (attention stages) is not reproduced;
    # a patch-embed projection stands in for forward_features.
    p = x.reshape(B, C, Hp, patch_size, Wp, patch_size)
    p = p.transpose(0, 2, 4, 1, 3, 5).reshape(B, S, K).astype(jnp.float32)

    # Pad the spatial axis to a multiple of 8 so spatial tiles are sublane
    # aligned; padded rows are all-zero and contribute nothing to the pools.
    Sp = _round_up(S, 8)
    if Sp != S:
        p = jnp.pad(p, ((0, 0), (0, Sp - S), (0, 0)))

    w = params["embed_w"].astype(jnp.float32)             # (K, D)
    b = params["embed_b"].astype(jnp.float32).reshape(1, -1)
    D = w.shape[1]

    # Lane-pad the classifier so the logits store is a full-width vst.
    num_classes = params["cls_b"].shape[0]
    NCp = _round_up(num_classes, 128)
    cw = jnp.zeros((D, NCp), jnp.float32).at[:, :num_classes].set(
        params["cls_w"].T)
    cb = jnp.zeros((1, NCp), jnp.float32).at[0, :num_classes].set(
        params["cls_b"])

    if mask is not None:
        mask_down = bilinear_resize_nchw(mask.astype(jnp.float32), Hp, Wp)
        m = mask_down.reshape(B, S, 1)
        if Sp != S:
            m = jnp.pad(m, ((0, 0), (0, Sp - S), (0, 0)))
    else:
        m = None

    logits_pad, pooled, background_pooled = fused_pool_classify(
        p, w, b, m, cw, cb, spatial=S)
    logits = logits_pad[:, :num_classes]
    return logits, pooled, background_pooled


# ---------------------------------------------------------------------------
# Pure-JAX reference (same math as the PyTorch module) for validation.
# ---------------------------------------------------------------------------
def reference_forward(params, x, mask=None, *, patch_size=4):
    B, C, H, W = x.shape
    Hp, Wp = H // patch_size, W // patch_size
    S = Hp * Wp
    p = x.reshape(B, C, Hp, patch_size, Wp, patch_size)
    p = p.transpose(0, 2, 4, 1, 3, 5).reshape(B, S, -1)
    feats = p @ params["embed_w"] + params["embed_b"].reshape(1, 1, -1)
    if mask is not None:
        md = bilinear_resize_nchw(mask.astype(jnp.float32), Hp, Wp)
        md = md.reshape(B, S, 1)
        msum = md.sum(axis=1)
        pooled = (feats * md).sum(axis=1) / (msum + 1e-8)
        bg = (feats * (1.0 - md)).sum(axis=1) / ((S - msum) + 1e-8)
    else:
        pooled = feats.mean(axis=1)
        bg = pooled
    logits = pooled @ params["cls_w"].T + params["cls_b"]
    return logits, pooled, bg


def init_params(key, in_dim, encoder_dim, num_classes):
    k1, k2, k3 = jax.random.split(key, 3)
    return {
        "embed_w": jax.random.normal(k1, (in_dim, encoder_dim), jnp.float32) * 0.02,
        "embed_b": jnp.zeros((1, encoder_dim), jnp.float32),
        "cls_w": jax.random.normal(k2, (num_classes, encoder_dim), jnp.float32) * 0.02,
        "cls_b": jax.random.normal(k3, (num_classes,), jnp.float32) * 0.01,
    }


if __name__ == "__main__":
    key = jax.random.PRNGKey(0)
    kx, km, kp = jax.random.split(key, 3)

    B, C, H, W = 2, 4, 16, 16
    patch_size = 4
    encoder_dim = 128
    num_classes = 2

    x = jax.random.normal(kx, (B, C, H, W), jnp.float32)
    mask = (jax.random.uniform(km, (B, 1, H, W)) > 0.5).astype(jnp.float32)

    params = init_params(kp, C * patch_size * patch_size, encoder_dim,
                         num_classes)

    # masked path
    logits, pooled, bg_pooled = swin_mim_classifier_forward(
        params, x, mask, patch_size=patch_size)
    jax.block_until_ready((logits, pooled, bg_pooled))

    # mask=None path (adaptive average pooling)
    logits2, pooled2, bg_pooled2 = swin_mim_classifier_forward(
        params, x, None, patch_size=patch_size)
    jax.block_until_ready((logits2, pooled2, bg_pooled2))

    assert logits.shape == (B, num_classes)
    assert pooled.shape == (B, encoder_dim)
    assert bg_pooled.shape == (B, encoder_dim)
    assert logits2.shape == (B, num_classes)

    # numeric check against the plain-JAX reference
    r_logits, r_pooled, r_bg = reference_forward(params, x, mask,
                                                 patch_size=patch_size)
    r_logits2, r_pooled2, r_bg2 = reference_forward(params, x, None,
                                                    patch_size=patch_size)
    for got, want, name in (
            (logits, r_logits, "logits"),
            (pooled, r_pooled, "pooled"),
            (bg_pooled, r_bg, "background_pooled"),
            (logits2, r_logits2, "logits_no_mask"),
            (pooled2, r_pooled2, "pooled_no_mask"),
            (bg_pooled2, r_bg2, "background_pooled_no_mask")):
        assert bool(jnp.allclose(got, want, rtol=1e-2, atol=1e-3)), (
            f"{name} mismatch vs reference")

    print("KERNEL_OK")
</pallas_src>

<mosaic_0001>
module attributes {stable_mosaic.version = 11 : i64} {
  func.func @_fused_masked_kernel(%arg0: i32, %arg1: i32, %arg2: memref<2x8x64xf32, #tpu.memory_space<vmem>>, %arg3: memref<64x128xf32, #tpu.memory_space<vmem>>, %arg4: memref<1x128xf32, #tpu.memory_space<vmem>>, %arg5: memref<2x8x1xf32, #tpu.memory_space<vmem>>, %arg6: memref<128x128xf32, #tpu.memory_space<vmem>>, %arg7: memref<1x128xf32, #tpu.memory_space<vmem>>, %arg8: memref<2x128xf32, #tpu.memory_space<vmem>>, %arg9: memref<2x128xf32, #tpu.memory_space<vmem>>, %arg10: memref<2x128xf32, #tpu.memory_space<vmem>>, %arg11: memref<2x128xf32, #tpu.memory_space<vmem>>, %arg12: memref<2x128xf32, #tpu.memory_space<vmem>>, %arg13: memref<2x1xf32, #tpu.memory_space<vmem>>) attributes {dimension_semantics = [#tpu.dimension_semantics<parallel>, #tpu.dimension_semantics<arbitrary>], iteration_bounds = array<i64: 1, 2>, scalar_prefetch = 0 : i64, scratch_operands = 3 : i64, tpu.core_type = #tpu.core_type<tc>, window_params = [{transform_indices = @transform_0, window_bounds = array<i64: 2, 8, 64>}, {pipeline_mode = #tpu.pipeline_mode<synchronous>, transform_indices = @transform_1, window_bounds = array<i64: 64, 128>}, {pipeline_mode = #tpu.pipeline_mode<synchronous>, transform_indices = @transform_2, window_bounds = array<i64: 1, 128>}, {transform_indices = @transform_3, window_bounds = array<i64: 2, 8, 1>}, {pipeline_mode = #tpu.pipeline_mode<synchronous>, transform_indices = @transform_4, window_bounds = array<i64: 128, 128>}, {pipeline_mode = #tpu.pipeline_mode<synchronous>, transform_indices = @transform_5, window_bounds = array<i64: 1, 128>}, {transform_indices = @transform_6, window_bounds = array<i64: 2, 128>}, {transform_indices = @transform_7, window_bounds = array<i64: 2, 128>}, {transform_indices = @transform_8, window_bounds = array<i64: 2, 128>}]} {
    %c0_i32 = arith.constant 0 : i32
    %0 = arith.cmpi eq, %arg1, %c0_i32 : i32
    %1 = arith.extui %0 : i1 to i32
    %c0_i32_0 = arith.constant 0 : i32
    %2 = arith.cmpi ne, %1, %c0_i32_0 : i32
    scf.if %2 {
      %cst_24 = arith.constant 0.000000e+00 : f32
      %26 = vector.broadcast %cst_24 : f32 to vector<2x128xf32>
      %c0_25 = arith.constant 0 : index
      %c0_26 = arith.constant 0 : index
      %27 = vector.load %arg11[%c0_25, %c0_26] : memref<2x128xf32, #tpu.memory_space<vmem>>, vector<2x128xf32>
      tpu.vector_store %arg11[%c0_25, %c0_26], %26 {strides = array<i32>} : memref<2x128xf32, #tpu.memory_space<vmem>>, vector<2x128xf32>,
      %cst_27 = arith.constant 0.000000e+00 : f32
      %28 = vector.broadcast %cst_27 : f32 to vector<2x128xf32>
      %c0_28 = arith.constant 0 : index
      %c0_29 = arith.constant 0 : index
      %29 = vector.load %arg12[%c0_28, %c0_29] : memref<2x128xf32, #tpu.memory_space<vmem>>, vector<2x128xf32>
      tpu.vector_store %arg12[%c0_28, %c0_29], %28 {strides = array<i32>} : memref<2x128xf32, #tpu.memory_space<vmem>>, vector<2x128xf32>,
      %cst_30 = arith.constant 0.000000e+00 : f32
      %30 = vector.broadcast %cst_30 : f32 to vector<2x1xf32>
      %c0_31 = arith.constant 0 : index
      %c0_32 = arith.constant 0 : index
      %31 = vector.load %arg13[%c0_31, %c0_32] : memref<2x1xf32, #tpu.memory_space<vmem>>, vector<2x1xf32>
      tpu.vector_store %arg13[%c0_31, %c0_32], %30 {strides = array<i32>} : memref<2x1xf32, #tpu.memory_space<vmem>>, vector<2x1xf32>,
    } else {
    }
    %c0 = arith.constant 0 : index
    %c0_1 = arith.constant 0 : index
    %c0_2 = arith.constant 0 : index
    %3 = vector.load %arg2[%c0, %c0_1, %c0_2] : memref<2x8x64xf32, #tpu.memory_space<vmem>>, vector<2x8x64xf32>
    %4 = vector.shape_cast %3 : vector<2x8x64xf32> to vector<16x64xf32>
    %c0_3 = arith.constant 0 : index
    %c0_4 = arith.constant 0 : index
    %5 = vector.load %arg3[%c0_3, %c0_4] : memref<64x128xf32, #tpu.memory_space<vmem>>, vector<64x128xf32>
    %cst = arith.constant dense<0.000000e+00> : vector<16x128xf32>
    %6 = tpu.matmul %4, %5, %cst {dimension_numbers = #tpu.dot_dimension_numbers<[1], [0], [0], [1], [0, 0, 1, 1], [], []>} : vector<16x64xf32>, vector<64x128xf32>, vector<16x128xf32> -> vector<16x128xf32>
    %7 = vector.shape_cast %6 : vector<16x128xf32> to vector<2x8x128xf32>
    %c0_5 = arith.constant 0 : index
    %c0_6 = arith.constant 0 : index
    %c0_7 = arith.constant 0 : index
    %8 = vector.load %arg5[%c0_5, %c0_6, %c0_7] : memref<2x8x1xf32, #tpu.memory_space<vmem>>, vector<2x8x1xf32>
    %c0_8 = arith.constant 0 : index
    %c0_9 = arith.constant 0 : index
    %9 = vector.load %arg11[%c0_8, %c0_9] : memref<2x128xf32, #tpu.memory_space<vmem>>, vector<2x128xf32>
    %cst_10 = arith.constant dense<0.000000e+00> : vector<2x128xf32>
    %10 = vector.multi_reduction <add>, %7, %cst_10 [1] : vector<2x8x128xf32> to vector<2x128xf32>
    %11 = arith.addf %9, %10 : vector<2x128xf32>
    %c0_11 = arith.constant 0 : index
    %c0_12 = arith.constant 0 : index
    %12 = vector.load %arg11[%c0_11, %c0_12] : memref<2x128xf32, #tpu.memory_space<vmem>>, vector<2x128xf32>
    tpu.vector_store %arg11[%c0_11, %c0_12], %11 {strides = array<i32>} : memref<2x128xf32, #tpu.memory_space<vmem>>, vector<2x128xf32>,
    %c0_13 = arith.constant 0 : index
    %c0_14 = arith.constant 0 : index
    %13 = vector.load %arg12[%c0_13, %c0_14] : memref<2x128xf32, #tpu.memory_space<vmem>>, vector<2x128xf32>
    %14 = vector.broadcast %8 : vector<2x8x1xf32> to vector<2x8x128xf32>
    %15 = arith.mulf %7, %14 : vector<2x8x128xf32>
    %cst_15 = arith.constant dense<0.000000e+00> : vector<2x128xf32>
    %16 = vector.multi_reduction <add>, %15, %cst_15 [1] : vector<2x8x128xf32> to vector<2x128xf32>
    %17 = arith.addf %13, %16 : vector<2x128xf32>
    %c0_16 = arith.constant 0 : index
    %c0_17 = arith.constant 0 : index
    %18 = vector.load %arg12[%c0_16, %c0_17] : memref<2x128xf32, #tpu.memory_space<vmem>>, vector<2x128xf32>
    tpu.vector_store %arg12[%c0_16, %c0_17], %17 {strides = array<i32>} : memref<2x128xf32, #tpu.memory_space<vmem>>, vector<2x128xf32>,
    %c0_18 = arith.constant 0 : index
    %c0_19 = arith.constant 0 : index
    %19 = vector.load %arg13[%c0_18, %c0_19] : memref<2x1xf32, #tpu.memory_space<vmem>>, vector<2x1xf32>
    %cst_20 = arith.constant dense<0.000000e+00> : vector<2x1xf32>
    %20 = vector.multi_reduction <add>, %8, %cst_20 [1] : vector<2x8x1xf32> to vector<2x1xf32>
    %21 = arith.addf %19, %20 : vector<2x1xf32>
    %c0_21 = arith.constant 0 : index
    %c0_22 = arith.constant 0 : index
    %22 = vector.load %arg13[%c0_21, %c0_22] : memref<2x1xf32, #tpu.memory_space<vmem>>, vector<2x1xf32>
    tpu.vector_store %arg13[%c0_21, %c0_22], %21 {strides = array<i32>} : memref<2x1xf32, #tpu.memory_space<vmem>>, vector<2x1xf32>,
    %c1_i32 = arith.constant 1 : i32
    %23 = arith.cmpi eq, %arg1, %c1_i32 : i32
    %24 = arith.extui %23 : i1 to i32
    %c0_i32_23 = arith.constant 0 : i32
    %25 = arith.cmpi ne, %24, %c0_i32_23 : i32
    scf.if %25 {
      %c0_24 = arith.constant 0 : index
      %c0_25 = arith.constant 0 : index
      %26 = vector.load %arg4[%c0_24, %c0_25] : memref<1x128xf32, #tpu.memory_space<vmem>>, vector<1x128xf32>
      %c0_26 = arith.constant 0 : index
      %c0_27 = arith.constant 0 : index
      %27 = vector.load %arg13[%c0_26, %c0_27] : memref<2x1xf32, #tpu.memory_space<vmem>>, vector<2x1xf32>
      %c0_28 = arith.constant 0 : index
      %c0_29 = arith.constant 0 : index
      %28 = vector.load %arg11[%c0_28, %c0_29] : memref<2x128xf32, #tpu.memory_space<vmem>>, vector<2x128xf32>
      %cst_30 = arith.constant 1.600000e+01 : f32
      %29 = vector.broadcast %cst_30 : f32 to vector<1x128xf32>
      %30 = arith.mulf %29, %26 : vector<1x128xf32>
      %31 = vector.broadcast %30 : vector<1x128xf32> to vector<2x128xf32>
      %32 = arith.addf %28, %31 : vector<2x128xf32>
      %c0_31 = arith.constant 0 : index
      %c0_32 = arith.constant 0 : index
      %33 = vector.load %arg12[%c0_31, %c0_32] : memref<2x128xf32, #tpu.memory_space<vmem>>, vector<2x128xf32>
      %34 = vector.broadcast %27 : vector<2x1xf32> to vector<2x128xf32>
      %35 = vector.broadcast %26 : vector<1x128xf32> to vector<2x128xf32>
      %36 = arith.mulf %34, %35 : vector<2x128xf32>
      %37 = arith.addf %33, %36 : vector<2x128xf32>
      %cst_33 = arith.constant 9.99999993E-9 : f32
      %38 = vector.broadcast %cst_33 : f32 to vector<2x1xf32>
      %39 = arith.addf %27, %38 : vector<2x1xf32>
      %40 = tpu.reciprocal %39 {approx = true} : vector<2x1xf32> -> vector<2x1xf32>
      %41 = vector.broadcast %40 : vector<2x1xf32> to vector<2x128xf32>
      %42 = arith.mulf %37, %41 : vector<2x128xf32>
      %43 = arith.subf %32, %37 : vector<2x128xf32>
      %cst_34 = arith.constant 1.600000e+01 : f32
      %44 = vector.broadcast %cst_34 : f32 to vector<2x1xf32>
      %45 = arith.subf %44, %27 : vector<2x1xf32>
      %cst_35 = arith.constant 9.99999993E-9 : f32
      %46 = vector.broadcast %cst_35 : f32 to vector<2x1xf32>
      %47 = arith.addf %45, %46 : vector<2x1xf32>
      %48 = tpu.reciprocal %47 {approx = true} : vector<2x1xf32> -> vector<2x1xf32>
      %49 = vector.broadcast %48 : vector<2x1xf32> to vector<2x128xf32>
      %50 = arith.mulf %43, %49 : vector<2x128xf32>
      %c0_36 = arith.constant 0 : index
      %c0_37 = arith.constant 0 : index
      %51 = vector.load %arg9[%c0_36, %c0_37] : memref<2x128xf32, #tpu.memory_space<vmem>>, vector<2x128xf32>
      tpu.vector_store %arg9[%c0_36, %c0_37], %42 {strides = array<i32>} : memref<2x128xf32, #tpu.memory_space<vmem>>, vector<2x128xf32>,
      %c0_38 = arith.constant 0 : index
      %c0_39 = arith.constant 0 : index
      %52 = vector.load %arg10[%c0_38, %c0_39] : memref<2x128xf32, #tpu.memory_space<vmem>>, vector<2x128xf32>
      tpu.vector_store %arg10[%c0_38, %c0_39], %50 {strides = array<i32>} : memref<2x128xf32, #tpu.memory_space<vmem>>, vector<2x128xf32>,
      %c0_40 = arith.constant 0 : index
      %c0_41 = arith.constant 0 : index
      %53 = vector.load %arg6[%c0_40, %c0_41] : memref<128x128xf32, #tpu.memory_space<vmem>>, vector<128x128xf32>
      %cst_42 = arith.constant dense<0.000000e+00> : vector<2x128xf32>
      %54 = tpu.matmul %42, %53, %cst_42 {dimension_numbers = #tpu.dot_dimension_numbers<[1], [0], [0], [1], [0, 0, 1, 1], [], []>} : vector<2x128xf32>, vector<128x128xf32>, vector<2x128xf32> -> vector<2x128xf32>
      %c0_43 = arith.constant 0 : index
      %c0_44 = arith.constant 0 : index
      %55 = vector.load %arg7[%c0_43, %c0_44] : memref<1x128xf32, #tpu.memory_space<vmem>>, vector<1x128xf32>
      %56 = vector.broadcast %55 : vector<1x128xf32> to vector<2x128xf32>
      %57 = arith.addf %54, %56 : vector<2x128xf32>
      %c0_45 = arith.constant 0 : index
      %c0_46 = arith.constant 0 : index
      %58 = vector.load %arg8[%c0_45, %c0_46] : memref<2x128xf32, #tpu.memory_space<vmem>>, vector<2x128xf32>
      tpu.vector_store %arg8[%c0_45, %c0_46], %57 {strides = array<i32>} : memref<2x128xf32, #tpu.memory_space<vmem>>, vector<2x128xf32>,
    } else {
    }
    return
  }
  func.func @transform_0(%arg0: i32, %arg1: i32) -> (i32, i32, i32) {
    %c0_i32 = arith.constant 0 : i32
    %c0_i32_0 = arith.constant 0 : i32
    return %arg0, %arg1, %c0_i32 : i32, i32, i32
  }
  func.func @transform_1(%arg0: i32, %arg1: i32) -> (i32, i32) {
    %c0_i32 = arith.constant 0 : i32
    %c0_i32_0 = arith.constant 0 : i32
    %c0_i32_1 = arith.constant 0 : i32
    return %c0_i32, %c0_i32_0 : i32, i32
  }
  func.func @transform_2(%arg0: i32, %arg1: i32) -> (i32, i32) {
    %c0_i32 = arith.constant 0 : i32
    %c0_i32_0 = arith.constant 0 : i32
    %c0_i32_1 = arith.constant 0 : i32
    return %c0_i32, %c0_i32_0 : i32, i32
  }
  func.func @transform_3(%arg0: i32, %arg1: i32) -> (i32, i32, i32) {
    %c0_i32 = arith.constant 0 : i32
    %c0_i32_0 = arith.constant 0 : i32
    return %arg0, %arg1, %c0_i32 : i32, i32, i32
  }
  func.func @transform_4(%arg0: i32, %arg1: i32) -> (i32, i32) {
    %c0_i32 = arith.constant 0 : i32
    %c0_i32_0 = arith.constant 0 : i32
    %c0_i32_1 = arith.constant 0 : i32
    return %c0_i32, %c0_i32_0 : i32, i32
  }
  func.func @transform_5(%arg0: i32, %arg1: i32) -> (i32, i32) {
    %c0_i32 = arith.constant 0 : i32
    %c0_i32_0 = arith.constant 0 : i32
    %c0_i32_1 = arith.constant 0 : i32
    return %c0_i32, %c0_i32_0 : i32, i32
  }
  func.func @transform_6(%arg0: i32, %arg1: i32) -> (i32, i32) {
    %c0_i32 = arith.constant 0 : i32
    %c0_i32_0 = arith.constant 0 : i32
    return %arg0, %c0_i32 : i32, i32
  }
  func.func @transform_7(%arg0: i32, %arg1: i32) -> (i32, i32) {
    %c0_i32 = arith.constant 0 : i32
    %c0_i32_0 = arith.constant 0 : i32
    return %arg0, %c0_i32 : i32, i32
  }
  func.func @transform_8(%arg0: i32, %arg1: i32) -> (i32, i32) {
    %c0_i32 = arith.constant 0 : i32
    %c0_i32_0 = arith.constant 0 : i32
    return %arg0, %c0_i32 : i32, i32
  }
}

</mosaic_0001>

<bundles_post_ra>
// kernel: tpu_custom_call.1
= control target key start
LH: loop header
LB: loop body
LE: loop exit
PB: predicated region body
PF: predicated region fallthrough
CT: control target
= control target key end

     0   :  { %14 = vsyncpa [#allocation7], 0  ;;  %s1659_s0 = inlined_call_operand.vmem [shape: f32[2,16,64], index: 0, kind: input, shape index: {}]   ;;  %s1660_s1 = inlined_call_operand.hbm [shape: f32[64,128], index: 1, kind: input, shape index: {}]   ;;  %s1661_s2 = inlined_call_operand.vmem [shape: f32[1,128], index: 2, kind: input, shape index: {}]   ;;  %s1662_s3 = inlined_call_operand.vmem [shape: f32[2,16,1], index: 3, kind: input, shape index: {}]   ;;  %s1663_s4 = inlined_call_operand.hbm [shape: f32[128,128], index: 4, kind: input, shape index: {}]   ;;  %s1664_s5 = inlined_call_operand.vmem [shape: f32[1,128], index: 5, kind: input, shape index: {}]   ;;  %s1665_s6 = inlined_call_operand.hbm [shape: f32[2,128], index: 6, kind: output, shape index: {0}]   ;;  %s1666_s7 = inlined_call_operand.hbm [shape: f32[2,128], index: 7, kind: output, shape index: {1}]   ;;  %s1667_s8 = inlined_call_operand.hbm [shape: f32[2,128], index: 8, kind: output, shape index: {2}]  }
   0x1   :  { %15 = vsyncpa [#allocation11], 0 }
   0x2   :  { %16 = vsyncpa [#allocation8], 0 }
   0x3   :  { %17 = vsyncpa [#allocation14], 0  ;;  %s1425_s27 = smov 0   ;;  %s1427_s28 = smov 0  }
   0x4   :  { %s1429_s29 = smov 0   ;;  %s1431_s30 = smov 0  }
   0x5   :  { %s1433_s9 = smov 0  }
   0x6 LB: > { %s1671_s10 = sadd.s32 4294967295, %s1365_s9   ;;  %s32_s11 = sadd.s32 1, %s1361_s30  ;;  %s1365_s9 = sphi %s1433_s9, %s23_s9   ;;  %s1361_s30 = sphi %s1431_s30, %s1690_s30   ;;  %s1357_s29 = sphi %s1429_s29, %s1689_s29   ;;  %s1353_s28 = sphi %s1427_s28, %s1688_s28   ;;  %s1349_s27 = sphi %s1425_s27, %s1687_s27  }
   0x7   : > { %p33_p0 = scmp.ge.s32.totalorder %s32_s11, 2  ;;  %s44_s12 = sadd.s32 1, %s1353_s28 }
   0x8   : > { %p51_p1 = scmp.ne.s32.totalorder %s1353_s28, %s1349_s27  ;;  %p52_p2 = scmp.eq.s32.totalorder %s1365_s9, 0 }
   0x9   : > { %s1692_s11 = smov (%p33_p0, %s32_s11), 0  ;;  %p933_p4 = scmp.ge.s32.totalorder %s1365_s9, 1 }
   0xa   : > { %1673 = sst [smem:[#allocation20_spill]] %s1692_s11  ;;  %p1458_p3 = por %p52_p2, %p51_p1 }
   0xb   : > { %s40_s14 = ssub.s32 %s1361_s30, %s1692_s11  ;;  %p258_p5 = scmp.lt.s32.totalorder %s1365_s9, 3 }
   0xc   : > { %s1674_s13 = scalar_select %p1458_p3, 1, 0 }
   0xd   : > { %p42_p6 = scmp.eq.s32.totalorder %s40_s14, 0  ;;  %p1466_p7 = pnand %p933_p4, %p258_p5 }
   0xe   : > { %p1472_p8 = scmp.eq.s32.totalorder %s1671_s10, 0  ;;  %s1367_s18 = smov [#allocation6]  }
   0xf   : > { %s1675_s15 = scalar_select %p1466_p7, 1, 0 }
  0x10   : > { %s1676_s16 = scalar_select %p1472_p8, 1, 0 }
  0x11   : > { %s1477_s17 = scalar_select %p42_p6, %s1353_s28, %s44_s12  }
  0x12   : > { %p1100_p9 = pneg %p1466_p7  ;;  %s270_s19 = sshll.u32 %s1367_s18, 4  ;;  %s271_s19 = int_to_ptr.vmem [resolvable:$true] %s270_s19 }
  0x13   : > { %1677 = sst [smem:[#allocation21_spill]] %s1477_s17  ;;  %s1368_s21 = smov [#allocation10]  }
  0x14   : > { %p1483_p10 = pnand %p1472_p8, %p1100_p9  ;;  %s286_s22 = sshll.u32 %s1368_s21, 4  ;;  %s287_s22 = int_to_ptr.vmem [resolvable:$true] %s286_s22 }
  0x15   : > { %s1177_s25 = scalar_lea.hbm %s1660_s1, 1024 }
  0x16   : > { %p1178_p11 = scmp.ne.s32.totalorder %s1660_s1, %s1177_s25  ;;  %p1179_p12 = pneg %p1483_p10 }
  0x17   : > { %p1184_p1 = scmp.lt.u32.totalorder %s1177_s25, %s1660_s1 }
  0x18   : > { %p1180_p13 = pnand %p1179_p12, %p1178_p11 }
  0x1a   : > { %p1181_p0 = pneg %p1180_p13 }
  0x1c   : > { %p1186_p2 = pnand %p1184_p1, %p1181_p0 }
  0x1e   : > { %1189 = shalt.err (!%p1186_p2)
}
  0x1f   : > { %s1190_s21 = scalar_lea.vmem %s271_s19, 1024  ;;  %p1198_p9 = scmp.lt.s32.totalorder %s271_s19, %s271_s19 }
  0x20   : > { %p1191_p4 = scmp.ne.s32.totalorder %s271_s19, %s1190_s21  ;;  %p1199_p8 = scmp.lt.s32.totalorder %s1190_s21, %s1190_s21 }
  0x22   : > { %p1193_p5 = pnand %p1191_p4, %p1179_p12  ;;  %p1200_p7 = por %p1199_p8, %p1198_p9 }
  0x24   : > { %p1194_p6 = pneg %p1193_p5 }
  0x26   : > { %p1201_p3 = pnand %p1200_p7, %p1194_p6 }
  0x28   : > { %1204 = shalt.err (!%p1201_p3)
}
  0x29   : > { %s1369_s23 = smov 128   ;;  %s1370_s24 = smov 8  }
  0x2a   : > { %1103 = dma.hbm_to_vmem [thread:$0]  (!%p1483_p10), %s1660_s1, 1024, %s271_s19, [#allocation7], %s1369_s23, %s1369_s23, %s1370_s24  }
  0x2b   : > { %s1205_s18 = scalar_lea.hbm %s1663_s4, 2048 }
  0x2c   : > { %p1206_p8 = scmp.ne.s32.totalorder %s1663_s4, %s1205_s18  ;;  %p1212_p11 = scmp.lt.u32.totalorder %s1205_s18, %s1663_s4 }
  0x2e   : > { %p1208_p3 = pnand %p1206_p8, %p1179_p12 }
  0x30   : > { %p1209_p7 = pneg %p1208_p3 }
  0x32   : > { %p1214_p13 = pnand %p1212_p11, %p1209_p7 }
  0x34   : > { %1217 = shalt.err (!%p1214_p13)
}
  0x35   : > { %s1218_s19 = scalar_lea.vmem %s287_s22, 2048  ;;  %p1226_p4 = scmp.lt.s32.totalorder %s287_s22, %s287_s22 }
  0x36   : > { %p1219_p0 = scmp.ne.s32.totalorder %s287_s22, %s1218_s19  ;;  %p1227_p5 = scmp.lt.s32.totalorder %s1218_s19, %s1218_s19 }
  0x38   : > { %p1221_p1 = pnand %p1219_p0, %p1179_p12  ;;  %p1228_p6 = por %p1227_p5, %p1226_p4 }
  0x3a   : > { %p1222_p2 = pneg %p1221_p1 }
  0x3c   : > { %p1229_p9 = pnand %p1228_p6, %p1222_p2 }
  0x3e   : > { %1232 = shalt.err (!%p1229_p9)
}
  0x3f   : > { %1106 = dma.hbm_to_vmem [thread:$0]  (!%p1483_p10), %s1663_s4, 2048, %s287_s22, [#allocation11], %s1369_s23, %s1369_s23, %s1370_s24  }
  0x40   : > { %p936_p8 = scmp.ge.s32.totalorder %s1365_s9, 2 }
  0x41   : > { %p1679_p3 = scmp.ne.s32.totalorder (!%p936_p8), %s1674_s13, 0 }
  0x42   : > { %299 = sbr.rel (%p936_p8) target bundleno = 89 (0x59), region = 32 }
  0x49   : > { %302 = sbr.rel (!%p1679_p3) target bundleno = 80 (0x50), region = 36  ;;  %s304_s17 = sand.u32 (%p1679_p3), 1, %s1353_s28  }
  0x4a   : > { %s938_s25 = sshll.u32 (%p1679_p3), %s1361_s30, 3  ;;  %s937_s26 = sshll.u32 (%p1679_p3), %s304_s17, 4 }
  0x4b   : > { %s311_s18 = scalar_lea.vmem (%p1679_p3), %s1659_s0, %s938_s25  ;;  %s306_s20 = scalar_lea.vmem (%p1679_p3), [#allocation5], %s937_s26 }
  0x4c   : > { %v341_v0 = vld [vmem:[%s311_s18] sm:$0xff] (%p1679_p3)  ;;  %v343_v1 = vld [vmem:[%s311_s18 + $0x10] sm:$0xff] (%p1679_p3) }
  0x4d   : > { %342 = vst [vmem:[%s306_s20] sm:$0xff] (%p1679_p3), %v341_v0  ;;  %344 = vst [vmem:[%s306_s20 + $0x8] sm:$0xff] (%p1679_p3), %v343_v1 }
  0x50 PF: > { %p1680_p10 = scmp.ne.s32.totalorder %s1674_s13, 0 }
  0x51   : > { %s352_s22 = sand.u32 (%p1680_p10), 1, %s1353_s28   ;;  %s940_s23 = sshll.u32 (%p1680_p10), %s1361_s30, 3 }
  0x52   : > { %350 = sbr.rel (!%p1680_p10) target bundleno = 89 (0x59), region = 74  ;;  %s939_s24 = sshll.u32 (%p1680_p10), %s352_s22, 4 }
  0x53   : > { %s359_s10 = scalar_lea.vmem (%p1680_p10), %s1662_s3, %s940_s23  ;;  %s354_s11 = scalar_lea.vmem (%p1680_p10), [#allocation9], %s939_s24 }
  0x54   : > { %v389_v2 = vld [vmem:[%s359_s10] sm:$0xff] (%p1680_p10)  ;;  %v391_v3 = vld [vmem:[%s359_s10 + $0x10] sm:$0xff] (%p1680_p10) }
  0x55   : > { %390 = vst [vmem:[%s354_s11] sm:$0xff] (%p1680_p10), %v389_v2  ;;  %392 = vst [vmem:[%s354_s11 + $0x8] sm:$0xff] (%p1680_p10), %v391_v3 }
  0x59 PF: > { %p1681_p12 = scmp.ne.s32.totalorder %s1675_s15, 0 }
  0x5a   : > { %s404_s13 = sand.u32 (!%p1681_p12), 1, %s1349_s27   ;;  %p1682_p7 = scmp.ne.s32.totalorder (!%p1681_p12), %s1676_s16, 0 }
  0x5b   : > { %401 = sbr.rel (%p1681_p12) target bundleno = 657 (0x291), region = 112  ;;  %s1547_s17 = sshll.u32 (!%p1681_p12), %s404_s13, 4 }
  0x5c   : > { %s406_s25 = scalar_lea.vmem (!%p1681_p12), [#allocation5], %s1547_s17 }
  0x62   : > { %1332 = dma.done.wait (%p1682_p7), [#allocation7], 1024  }
  0x63   : > { %1334 = vsyncadd (%p1682_p7), [#allocation7], 4294966272  ;;  %s417_s26 = scalar_lea.vmem [#allocation9], %s1547_s17 }
  0x64   : > { %1336 = dma.done.wait (%p1682_p7), [#allocation11], 2048  }
  0x65   : > { %1338 = vsyncadd (%p1682_p7), [#allocation11], 4294965248  ;;  %p946_p11 = scmp.ne.s32.totalorder %s1357_s29, 0 }
  0x66   : > { %vm459_vm0 = vcmask (!%p946_p11), 1024   ;;  %v1371_v4 = vmov (!%p946_p11), 0.0  }
  0x67   : > { %456 = sbr.rel (%p946_p11) target bundleno = 110 (0x6e), region = 132  ;;  %457 = vst [vmem:[#allocation2] sm:$0x3] (!%p946_p11), %v1371_v4  ;;  %458 = vst [vmem:[#allocation3] sm:$0x3] (!%p946_p11), %v1371_v4 }
  0x68   : > { %460 = vst.msk [vmem:[#allocation4] sm:$0x3] (!%p946_p11), %vm459_vm0, %v1371_v4 }
  0x6e PF: > { %v463_v5 = vld [vmem:[#allocation6] sm:$0xff]  ;;  %v464_v6 = vld [vmem:[#allocation6 + $0x8] sm:$0xff]  ;;  %v465_v7 = vld [vmem:[#allocation6 + $0x10] sm:$0xff]  ;;  %vm471_vm1 = vcmask 523264   ;;  %v1372_v10 = vmov 0   ;;  %vm607_vm2 = vcmask 7168  }
  0x6f   : > { %v1040_v8 = vpack.c.bf16 %v464_v6, %v463_v5  ;;  %v466_v9 = vld [vmem:[#allocation6 + $0x18] sm:$0xff]  ;;  %1170 = vset.pattern.permute.xlu0 %v1372_v10  ;;  %v467_v12 = vld [vmem:[#allocation6 + $0x20] sm:$0xff]  ;;  %v468_v13 = vld [vmem:[#allocation6 + $0x28] sm:$0xff]  ;;  %vm570_vm3 = vcmask 1041409   ;;  %vm627_vm4 = vcmask 1024   ;;  %p949_p13 = scmp.ne.s32.totalorder %s1357_s29, 1 }
  0x70   : > { %v1044_v11 = vpack.c.bf16 %v466_v9, %v465_v7  ;;  %v461_v14 = vld [vmem:[%s406_s25] sm:$0xff]  ;;  %v554_v16 = vld [vmem:[%s417_s26 + $0x8] sm:$0xff]  ;;  %v1048_v19 = vpack.c.bf16 %v468_v13, %v467_v12  ;;  %vm1375_vm5 = vmmov (!%p949_p13), 0  }
  0x71   : > { %1041 = vmatprep.subr.bf16.mxu0 %v1040_v8  ;;  %1002 = vmatprep.mubr.msk.f32.mxu0 %vm471_vm1, %v461_v14  ;;  %v553_v15 = vld [vmem:[%s417_s26] sm:$0xff]  ;;  %v615_v18 = vsel %vm607_vm2, %v554_v16, 0.0  ;;  %v470_v23 = vld [vmem:[#allocation6 + $0x38] sm:$0xff]  ;;  %v679_v13 = vld [vmem:[#allocation10 + $0x8] sm:$0xff] (!%p949_p13)  ;;  %v1373_v14 = vmov (!%p949_p13), 0  }
  0x72   : > { %1043 = vmatpush3.bf16.msra.mxu0 %v1040_v8  ;;  %578 = vperm.xlu0 %1170, %v553_v15   ;;  %v608_v17 = vsel %vm607_vm2, %v553_v15, 0.0  ;;  %v616_v21 = vrot.slane %v615_v18, 4  ;;  %v469_v22 = vld [vmem:[#allocation6 + $0x30] sm:$0xff]  ;;  %v606_v34 = vld [vmem:[#allocation4] sm:$0x3]  ;;  %v678_v12 = vld [vmem:[#allocation10] sm:$0xff] (!%p949_p13) }
  0x73   : > { %1045 = vmatprep.subr.bf16.mxu0 %v1044_v11  ;;  %v609_v20 = vrot.slane %v608_v17, 4  ;;  %v1052_v26 = vpack.c.bf16 %v470_v23, %v469_v22  ;;  %v462_v36 = vld [vmem:[%s406_s25 + $0x8] sm:$0xff]  ;;  %1172 = vset.pattern.permute.xlu1 (!%p949_p13), %v1373_v14  ;;  %v682_v23 = vld [vmem:[#allocation10 + $0x20] sm:$0xff] (!%p949_p13) }
  0x74   : > { %v617_v25 = vadd.f32 %v616_v21, %v615_v18  ;;  %v555_v1 = vld [vmem:[#allocation2] sm:$0x3]  ;;  %v575_v6 = vld [vmem:[#allocation3] sm:$0x3]  ;;  %v680_v18 = vld [vmem:[#allocation10 + $0x10] sm:$0xff] (!%p949_p13) }
  0x75   : > { %v610_v24 = vadd.f32 %v609_v20, %v608_v17  ;;  %v1057_v17 = vpack.c.bf16 (!%p949_p13), %v679_v13, %v678_v12  ;;  %v1374_v20 = vmov (!%p949_p13), 0.0|0.0  }
  0x76   : > { %1047 = vmatpush3.bf16.msra.mxu0 %v1044_v11  ;;  %583 = vperm.xlu0 %1170, %v554_v16   ;;  %v618_v28 = vrot.slane %v617_v25, 2 }
  0x77   : > { %1049 = vmatprep.subr.bf16.mxu0 %v1048_v19  ;;  %v611_v27 = vrot.slane %v610_v24, 2 }
  0x78   : > { %v619_v30 = vadd.f32 %v618_v28, %v617_v25 }
  0x79   : > { %v612_v29 = vadd.f32 %v611_v27, %v610_v24  ;;  %v683_v24 = vld [vmem:[#allocation10 + $0x28] sm:$0xff] (!%p949_p13)  ;;  %v685_v27 = vld [vmem:[#allocation10 + $0x38] sm:$0xff] (!%p949_p13) }
  0x7a   : > { %1051 = vmatpush3.bf16.msra.mxu0 %v1048_v19  ;;  %v620_v32 = vrot.slane %v619_v30, 1  ;;  %1171 = vset.pattern.permute.xlu0 (!%p949_p13), %v1373_v14  ;;  %v681_v19 = vld [vmem:[#allocation10 + $0x18] sm:$0xff] (!%p949_p13)  ;;  %v1063_v25 = vpack.c.bf16 (!%p949_p13), %v683_v24, %v682_v23 }
  0x7b   : > { %1053 = vmatprep.subr.bf16.mxu0 %v1052_v26  ;;  %v613_v31 = vrot.slane %v612_v29, 1  ;;  %v1060_v22 = vpack.c.bf16 (!%p949_p13), %v681_v19, %v680_v18 }
  0x7c   : > { %v621_v35 = vadd.f32 %v620_v32, %v619_v30  ;;  %v687_v30 = vld [vmem:[#allocation10 + $0x48] sm:$0xff] (!%p949_p13) }
  0x7d   : > { %v614_v33 = vadd.f32 %v613_v31, %v612_v29  ;;  %v686_v29 = vld [vmem:[#allocation10 + $0x40] sm:$0xff] (!%p949_p13) }
  0x7e   : > { %1055 = vmatpush3.bf16.msra.mxu0 %v1052_v26  ;;  %v684_v26 = vld [vmem:[#allocation10 + $0x30] sm:$0xff] (!%p949_p13) }
  0x7f   : > { %v624_v37 = vsel %vm570_vm3, %v621_v35, %v614_v33  ;;  %1056 = vmatprep.subr.bf16.mxu0 (!%p949_p13), %v1374_v20  ;;  %v1066_v28 = vpack.c.bf16 (!%p949_p13), %v685_v27, %v684_v26  ;;  %v1069_v33 = vpack.c.bf16 (!%p949_p13), %v687_v30, %v686_v29  ;;  %v688_v35 = vld [vmem:[#allocation10 + $0x50] sm:$0xff] (!%p949_p13) }
  0x80   : > { %v626_v38 = vadd.f32 %v624_v37, %v606_v34  ;;  %v1376_v34 = vmov (!%p949_p13), 0.0  }
  0x81   : > { %1003 = vmatmul.mubr.msk.f32.vlgmr.msra.gmra.mrb[0].mxu0 %vm471_vm1, %v462_v36  ;;  %v689_v36 = vld [vmem:[#allocation10 + $0x58] sm:$0xff] (!%p949_p13) }
  0x82   : > { %628 = vst.msk [vmem:[#allocation4] sm:$0x3] %vm627_vm4, %v626_v38  ;;  %1058 = vmatpush3.bf16.msra.mxu0 (!%p949_p13), %v1057_v17  ;;  %1037 = vmatprep.mubr.msk.f32.mxu0 (!%p949_p13), %vm1375_vm5, %v1376_v34  ;;  %v1072_v37 = vpack.c.bf16 (!%p949_p13), %v689_v36, %v688_v35  ;;  %v690_v38 = vld [vmem:[#allocation10 + $0x60] sm:$0xff] (!%p949_p13) }
  0x83   : > { %1059 = vmatprep.subr.bf16.mxu0 (!%p949_p13), %v1374_v20 }
  0x86   : > { %1061 = vmatpush3.bf16.msra.mxu0 (!%p949_p13), %v1060_v22 }
  0x87   : > { %1062 = vmatprep.subr.bf16.mxu0 (!%p949_p13), %v1374_v20 }
  0x89   : > { %v634_v11 = vld [vmem:[#allocation4] sm:$0x3] (!%p949_p13) }
  0x8a   : > { %v658_v15 = vadd.f32 (!%p949_p13), 1e-08, %v634_v11  ;;  %v667_v16 = vsub.f32 (!%p949_p13), 16.0, %v634_v11  ;;  %647 = vperm.xlu0 (!%p949_p13), %1171, %v634_v11   ;;  %1064 = vmatpush3.bf16.msra.mxu0 (!%p949_p13), %v1063_v25 }
  0x8b   : > { %1065 = vmatprep.subr.bf16.mxu0 (!%p949_p13), %v1374_v20 }
  0x8c   : > { %1173 = vrcp.f32 (!%p949_p13), %v658_v15  ;;  %v668_v21 = vadd.f32 (!%p949_p13), 1e-08, %v667_v16 }
  0x8e   : > { %1175 = vrcp.f32 (!%p949_p13), %v668_v21  ;;  %1067 = vmatpush3.bf16.msra.mxu0 (!%p949_p13), %v1066_v28 }
  0x8f   : > { %1068 = vmatprep.subr.bf16.mxu0 (!%p949_p13), %v1374_v20 }
  0x92   : > { %1070 = vmatpush3.bf16.msra.mxu0 (!%p949_p13), %v1069_v33 }
  0x93   : > { %1071 = vmatprep.subr.bf16.mxu0 (!%p949_p13), %v1374_v20 }
  0x96   : > { %v1174_v31 = vpop.eup (!%p949_p13), %1173  ;;  %1073 = vmatpush3.bf16.msra.mxu0 (!%p949_p13), %v1072_v37 }
  0x97   : > { %662 = vperm.xlu0 (!%p949_p13), %1171, %v1174_v31   ;;  %1074 = vmatprep.subr.bf16.mxu0 (!%p949_p13), %v1374_v20 }
  0x98   : > { %v1176_v32 = vpop.eup (!%p949_p13), %1175 }
  0x99   : > { %672 = vperm.xlu1 (!%p949_p13), %1172, %v1176_v32  }
  0xf1   : > { %v579_v39 = vpop.permute.xlu0 %578 }
  0xf5   : > { %v584_v40 = vpop.permute.xlu0 %583 }
 0x154   : > { %v1004_v41 = vpop.f32.mrb[0].mxu0 }
 0x155   : > { %v562_v42 = vrot.slane %v1004_v41, 4  ;;  %v587_v43 = vmul.f32 %v1004_v41, %v584_v40  ;;  %v544_v44 = vpop.f32.mrb[1].mxu0 }
 0x156   : > { %v556_v45 = vrot.slane %v544_v44, 4  ;;  %v586_v46 = vmul.f32 %v579_v39, %v544_v44  ;;  %v691_v39 = vld [vmem:[#allocation10 + $0x68] sm:$0xff] (!%p949_p13) }
 0x157   : > { %v563_v47 = vadd.f32 %v1004_v41, %v562_v42  ;;  %v594_v48 = vrot.slane %v587_v43, 4  ;;  %v1075_v40 = vpack.c.bf16 (!%p949_p13), %v691_v39, %v690_v38  ;;  %v692_v41 = vld [vmem:[#allocation10 + $0x70] sm:$0xff] (!%p949_p13)  ;;  %v693_v42 = vld [vmem:[#allocation10 + $0x78] sm:$0xff] (!%p949_p13) }
 0x158   : > { %v557_v49 = vadd.f32 %v556_v45, %v544_v44  ;;  %v588_v50 = vrot.slane %v586_v46, 4  ;;  %v638_v44 = vlaneseq (!%p949_p13) }
 0x159   : > { %v564_v51 = vrot.slane %v563_v47, 2  ;;  %v595_v52 = vadd.f32 %v594_v48, %v587_v43  ;;  %1076 = vmatpush3.bf16.msra.mxu0 (!%p949_p13), %v1075_v40  ;;  %v1078_v43 = vpack.c.bf16 (!%p949_p13), %v693_v42, %v692_v41 }
 0x15a   : > { %v558_v53 = vrot.slane %v557_v49, 2  ;;  %v589_v54 = vadd.f32 %v588_v50, %v586_v46  ;;  %1077 = vmatprep.subr.bf16.mxu0 (!%p949_p13), %v1374_v20  ;;  %v639_v45 = vshrl.u32 (!%p949_p13), %v638_v44, 7  ;;  %v648_v50 = vpop.permute.xlu0 (!%p949_p13), %647 }
 0x15b   : > { %v565_v55 = vadd.f32 %v564_v51, %v563_v47  ;;  %v596_v56 = vrot.slane %v595_v52, 2  ;;  %v633_v47 = vld [vmem:[%s1661_s2] sm:$0x1] (!%p949_p13) }
 0x15c   : > { %v559_v57 = vadd.f32 %v558_v53, %v557_v49  ;;  %v590_v58 = vrot.slane %v589_v54, 2  ;;  %v640_v46 = vsub.s32 (!%p949_p13), 0, %v639_v45  ;;  %v636_v48 = vmul.f32 (!%p949_p13), 16.0, %v633_v47 }
 0x15d   : > { %v566_v59 = vrot.slane %v565_v55, 1  ;;  %v597_v60 = vadd.f32 %v596_v56, %v595_v52  ;;  %1079 = vmatpush3.bf16.msra.mxu0 (!%p949_p13), %v1078_v43 }
 0x15e   : > { %v560_v61 = vrot.slane %v559_v57, 1  ;;  %v591_v62 = vadd.f32 %v590_v58, %v589_v54  ;;  %v654_v49 = vrot.slane (!%p949_p13), %v633_v47, %v640_v46  ;;  %v641_v52 = vrot.slane (!%p949_p13), %v636_v48, %v640_v46  ;;  %v663_v58 = vpop.permute.xlu0 (!%p949_p13), %662 }
 0x15f   : > { %v567_v63 = vadd.f32 %v566_v59, %v565_v55  ;;  %v598_v0 = vrot.slane %v597_v60, 1 }
 0x160   : > { %v561_v2 = vadd.f32 %v560_v61, %v559_v57  ;;  %v592_v3 = vrot.slane %v591_v62, 1  ;;  %v656_v51 = vmul.f32 (!%p949_p13), %v654_v49, %v648_v50 }
 0x161   : > { %v599_v4 = vadd.f32 %v598_v0, %v597_v60  ;;  %632 = sbr.rel (%p949_p13) target bundleno = 586 (0x24a), region = 136  ;;  %v673_v60 = vpop.permute.xlu1 (!%p949_p13), %672 }
 0x162   : > { %v571_v5 = vsel %vm570_vm3, %v567_v63, %v561_v2  ;;  %v593_v7 = vadd.f32 %v592_v3, %v591_v62  ;;  %v950_v62 = vld [vmem:[%s1664_s5] ss:$0 sm:$0xff] (!%p949_p13) }
 0x163   : > { %v573_v8 = vadd.f32 %v571_v5, %v555_v1 }
 0x164   : > { %v602_v9 = vsel %vm570_vm3, %v599_v4, %v593_v7 }
 0x165   : > { %574 = vst [vmem:[#allocation2] sm:$0x3] %v573_v8  ;;  %v604_v10 = vadd.f32 %v602_v9, %v575_v6 }
 0x167   : > { %605 = vst [vmem:[#allocation3] sm:$0x3] %v604_v10 }
 0x16c   : > { %v635_v54 = vld [vmem:[#allocation2] sm:$0x3] }
 0x16d   : > { %v643_v56 = vadd.f32 %v641_v52, %v635_v54 }
 0x16e   : > { %v644_v53 = vld [vmem:[#allocation3] sm:$0x3] }
 0x16f   : > { %v657_v55 = vadd.f32 %v656_v51, %v644_v53 }
 0x171   : > { %v666_v57 = vsub.f32 %v643_v56, %v657_v55  ;;  %v665_v59 = vmul.f32 %v663_v58, %v657_v55 }
 0x173   : > { %676 = vst [vmem:[#allocation13] sm:$0x3] %v665_v59  ;;  %v675_v61 = vmul.f32 %v673_v60, %v666_v57  ;;  %1038 = vmatmul.mubr.f32.vlgmr.msra.gmra.mrb[0].mxu0 %v665_v59 }
 0x175   : > { %677 = vst [vmem:[#allocation15] sm:$0x3] %v675_v61 }
 0x246   : > { %v767_v63 = vpop.f32.mrb[0].mxu0 }
 0x247   : > { %v768_v0 = vadd.f32 %v950_v62, %v767_v63  ;;  %v1039_v1 = vpop.f32.mrb[1].mxu0 }
 0x249   : > { %771 = vst [vmem:[#allocation12] sm:$0x3] %v768_v0 }
 0x24a PF: > { %s1683_s12 = sadd.s32 4294967295, %s1365_s9   ;;  %s1377_s18 = smov [#allocation13]  }
 0x24b   : > { %p1578_p0 = scmp.eq.s32.totalorder %s1683_s12, 1  ;;  %s794_s20 = sshll.u32 %s1377_s18, 4  ;;  %s795_s20 = int_to_ptr.vmem [resolvable:$true] %s794_s20 }
 0x24c   : > { %s1233_s22 = scalar_lea.vmem %s795_s20, 32  ;;  %p1240_p5 = scmp.lt.s32.totalorder %s795_s20, %s795_s20 }
 0x24d   : > { %p1234_p1 = scmp.ne.s32.totalorder %s795_s20, %s1233_s22  ;;  %p1241_p6 = scmp.lt.s32.totalorder %s1233_s22, %s1233_s22 }
 0x24f   : > { %p1235_p2 = pnand %p1234_p1, %p1578_p0  ;;  %p1242_p9 = por %p1241_p6, %p1240_p5 }
 0x251   : > { %p1236_p4 = pneg %p1235_p2 }
 0x253   : > { %p1243_p8 = pnand %p1242_p9, %p1236_p4 }
 0x255   : > { %1246 = shalt.err (!%p1243_p8)
}
 0x256   : > { %s1247_s21 = scalar_lea.hbm %s1666_s7, 32 }
 0x257   : > { %p1248_p3 = scmp.ne.s32.totalorder %s1666_s7, %s1247_s21  ;;  %p1253_p7 = scmp.lt.u32.totalorder %s1247_s21, %s1666_s7 }
 0x259   : > { %p1249_p10 = pnand %p1248_p3, %p1578_p0 }
 0x25b   : > { %p1250_p12 = pneg %p1249_p10 }
 0x25d   : > { %p1255_p11 = pnand %p1253_p7, %p1250_p12 }
 0x25f   : > { %1258 = shalt.err (!%p1255_p11)
}
 0x260   : > { %1091 = dma.vmem_to_hbm [thread:$0]  (%p1578_p0), %s795_s20, 32, %s1666_s7, [#allocation14]  }
 0x261   : > { %s1378_s26 = smov [#allocation12]   ;;  %s1379_s29 = smov [#allocation15]  }
 0x262   : > { %s781_s27 = sshll.u32 %s1378_s26, 4  ;;  %s807_s15 = sshll.u32 %s1379_s29, 4  ;;  %s782_s27 = int_to_ptr.vmem [resolvable:$true] %s781_s27  ;;  %s808_s15 = int_to_ptr.vmem [resolvable:$true] %s807_s15 }
 0x263   : > { %s1259_s16 = scalar_lea.vmem %s782_s27, 32  ;;  %p1266_p4 = scmp.lt.s32.totalorder %s782_s27, %s782_s27 }
 0x264   : > { %p1260_p13 = scmp.ne.s32.totalorder %s782_s27, %s1259_s16  ;;  %p1267_p5 = scmp.lt.s32.totalorder %s1259_s16, %s1259_s16 }
 0x266   : > { %p1261_p1 = pnand %p1260_p13, %p1578_p0  ;;  %p1268_p6 = por %p1267_p5, %p1266_p4 }
 0x268   : > { %p1262_p2 = pneg %p1261_p1 }
 0x26a   : > { %p1269_p9 = pnand %p1268_p6, %p1262_p2 }
 0x26c   : > { %1272 = shalt.err (!%p1269_p9)
}
 0x26d   : > { %s1273_s20 = scalar_lea.hbm %s1665_s6, 32 }
 0x26e   : > { %p1274_p8 = scmp.ne.s32.totalorder %s1665_s6, %s1273_s20  ;;  %p1279_p12 = scmp.lt.u32.totalorder %s1273_s20, %s1665_s6 }
 0x270   : > { %p1275_p3 = pnand %p1274_p8, %p1578_p0 }
 0x272   : > { %p1276_p10 = pneg %p1275_p3 }
 0x274   : > { %p1281_p7 = pnand %p1279_p12, %p1276_p10 }
 0x276   : > { %1284 = shalt.err (!%p1281_p7)
}
 0x277   : > { %1089 = dma.vmem_to_hbm [thread:$0]  (%p1578_p0), %s782_s27, 32, %s1665_s6, [#allocation8]  }
 0x278   : > { %s1285_s11 = scalar_lea.vmem %s808_s15, 32  ;;  %p1292_p2 = scmp.lt.s32.totalorder %s808_s15, %s808_s15 }
 0x279   : > { %p1286_p11 = scmp.ne.s32.totalorder %s808_s15, %s1285_s11  ;;  %p1293_p4 = scmp.lt.s32.totalorder %s1285_s11, %s1285_s11 }
 0x27b   : > { %p1287_p13 = pnand %p1286_p11, %p1578_p0  ;;  %p1294_p5 = por %p1293_p4, %p1292_p2 }
 0x27d   : > { %p1288_p1 = pneg %p1287_p13 }
 0x27f   : > { %p1295_p6 = pnand %p1294_p5, %p1288_p1 }
 0x281   : > { %1298 = shalt.err (!%p1295_p6)
}
 0x282   : > { %s1299_s25 = scalar_lea.hbm %s1667_s8, 32 }
 0x283   : > { %p1300_p9 = scmp.ne.s32.totalorder %s1667_s8, %s1299_s25  ;;  %p1305_p10 = scmp.lt.u32.totalorder %s1299_s25, %s1667_s8 }
 0x285   : > { %p1301_p8 = pnand %p1300_p9, %p1578_p0 }
 0x287   : > { %p1302_p3 = pneg %p1301_p8 }
 0x289   : > { %p1307_p12 = pnand %p1305_p10, %p1302_p3 }
 0x28b   : > { %1310 = shalt.err (!%p1307_p12)
}
 0x28c   : > { %1093 = dma.vmem_to_hbm [thread:$0]  (%p1578_p0), %s808_s15, 32, %s1667_s8, [#allocation14]  }
 0x28d   : > { %1340 = dma.done.wait (%p1578_p0), [#allocation8], 32  }
 0x28e   : > { %1342 = vsyncadd (%p1578_p0), [#allocation8], 4294967264 }
 0x28f   : > { %1344 = dma.done.wait (%p1578_p0), [#allocation14], 64  }
 0x290   : > { %1346 = vsyncadd (%p1578_p0), [#allocation14], 4294967232 }
 0x291 PF: > { %s23_s9 = sadd.s32 1, %s1365_s9   ;;  %s1685_s20 = sld [smem:[#allocation21_spill]] }
 0x292   : > { %p20_p7 = scmp.ge.s32.totalorder %s23_s9, 4   ;;  %s1686_s22 = sld [smem:[#allocation20_spill]] }
 0x293   : > { %s1687_s27 = smov %s1353_s28  ;;  %s1689_s29 = smov %s1361_s30 }
 0x294   :  { %22 = sbr.rel (!%p20_p7) target bundleno = 6 (0x6), region = 196 }
 0x297   : > { %s1688_s28 = smov %s1685_s20 }
 0x298   : > { %s1690_s30 = smov %s1686_s22 }
 0x29b   :  { %828 = vsyncpa [#allocation7], 1 }
 0x29c   :  { %830 = vsyncpa [#allocation7 + $0x1], 1 }
 0x29d   :  { %831 = vsyncpa [#allocation11], 1 }
 0x29e   :  { %832 = vsyncpa [#allocation8], 1 }
 0x29f   :  { %834 = vsyncpa [#allocation8 + $0x1], 1 }
 0x2a0   :  { %835 = vsyncpa [#allocation14], 1 }

</bundles_post_ra>
